<compile_context>
chip_gen: v7x
topology: tpu7x:2x2x1
jax: 0.10.0
libtpu: 0.0.40
codegen_flags: <defaults>
</compile_context>

<pallas_src>
import jax
import jax.numpy as jnp
from jax import lax
from jax.experimental import pallas as pl
from jax.experimental.pallas import tpu as pltpu


# --------------------------------------------------------------------------
# Shared cell math (used by both the single-step and rollout kernels).
# --------------------------------------------------------------------------
def _cell_and_goal(f, lab, h, c, w_gate, w_fc, b_fc, xcat_ref):
    """One LSTMCell step + fc + renorm. All operands are VMEM values/refs."""
    B, F = f.shape
    L = lab.shape[1]
    H = h.shape[1]

    # Build [f | labels | h | 1 | 0-pad] in a VMEM scratch: one lane-dense
    # operand for a single MXU pass against the pre-packed (K_pad, 4H) gate
    # weight (bias folded in via the ones column).
    xcat_ref[...] = jnp.zeros_like(xcat_ref)
    xcat_ref[:, 0:F] = f
    xcat_ref[:, F:F + L] = lab
    xcat_ref[:, F + L:F + L + H] = h
    xcat_ref[:, F + L + H:F + L + H + 1] = jnp.ones((B, 1), jnp.float32)

    gates = jnp.dot(xcat_ref[...], w_gate, preferred_element_type=jnp.float32)

    # Lane-dense sigmoid over the full (B, 4H) vreg; tanh only on the g slice.
    sig = jax.nn.sigmoid(gates)
    i_g = sig[:, 0 * H:1 * H]
    f_g = sig[:, 1 * H:2 * H]
    o_g = sig[:, 3 * H:4 * H]
    g_g = jnp.tanh(gates[:, 2 * H:3 * H])

    c_new = f_g * c + i_g * g_g
    h_new = o_g * jnp.tanh(c_new)

    sub = jnp.dot(h_new, w_fc, preferred_element_type=jnp.float32) + b_fc

    # torch.renorm(sub, p=2, dim=0, maxnorm=1.0): clip per-row L2 norm at 1.
    sumsq = jnp.sum(sub * sub, axis=1, keepdims=True)
    scale = jnp.where(sumsq > 1.0, lax.rsqrt(sumsq), jnp.ones_like(sumsq))
    return sub * scale, h_new, c_new


# --------------------------------------------------------------------------
# Single-step kernel (== Manager.forward), packed lane-dense output.
# --------------------------------------------------------------------------
def _manager_step_kernel(f_ref, lab_ref, h_ref, c_ref,
                         w_gate_ref, w_fc_ref, b_fc_ref,
                         out_ref, xcat_ref):
    goal, h_new, c_new = _cell_and_goal(
        f_ref[...], lab_ref[...], h_ref[...], c_ref[...],
        w_gate_ref[...], w_fc_ref[...], b_fc_ref[...], xcat_ref)
    G = goal.shape[1]
    H = h_new.shape[1]
    # Single lane-dense output slab: [goal | h' | c' | 0-pad].
    out_ref[...] = jnp.zeros_like(out_ref)
    out_ref[:, 0:G] = goal
    out_ref[:, G:G + H] = h_new
    out_ref[:, G + H:G + 2 * H] = c_new


# --------------------------------------------------------------------------
# Multi-step rollout kernel: grid over time, h/c resident in VMEM scratch.
# --------------------------------------------------------------------------
def _manager_rollout_kernel(f_ref, lab_ref, h0_ref, c0_ref,
                            w_gate_ref, w_fc_ref, b_fc_ref,
                            goal_ref, hc_ref, xcat_ref, h_s, c_s):
    t = pl.program_id(0)

    @pl.when(t == 0)
    def _():
        h_s[...] = h0_ref[...]
        c_s[...] = c0_ref[...]

    goal, h_new, c_new = _cell_and_goal(
        f_ref[...], lab_ref[...], h_s[...], c_s[...],
        w_gate_ref[...], w_fc_ref[...], b_fc_ref[...], xcat_ref)

    h_s[...] = h_new
    c_s[...] = c_new
    goal_ref[...] = goal

    @pl.when(t == pl.num_programs(0) - 1)
    def _():
        H = h_new.shape[1]
        hc_ref[:, 0:H] = h_new
        hc_ref[:, H:2 * H] = c_new


# --------------------------------------------------------------------------
# One-time parameter preparation (hoisted out of the per-call path).
# --------------------------------------------------------------------------
def prepare_params(params):
    """Pack gate weights + bias into one zero-padded (K_pad, 4H) matrix."""
    w_ih = params["w_ih"]          # (4H, F+L)
    w_hh = params["w_hh"]          # (4H, H)
    H4 = w_ih.shape[0]
    FL = w_ih.shape[1]
    H = w_hh.shape[1]
    k = FL + H + 1                 # features + hidden + ones column for bias
    k_pad = ((k + 127) // 128) * 128
    w_gate = jnp.zeros((k_pad, H4), jnp.float32)
    w_gate = w_gate.at[0:FL, :].set(w_ih.T)
    w_gate = w_gate.at[FL:FL + H, :].set(w_hh.T)
    w_gate = w_gate.at[FL + H, :].set(params["b_ih"] + params["b_hh"])
    return {
        "w_gate": w_gate,                      # (k_pad, 4H)
        "w_fc_t": params["w_fc"].T,            # (H, G)
        "b_fc": params["b_fc"].reshape(1, -1), # (1, G)
    }


# --------------------------------------------------------------------------
# Wrappers
# --------------------------------------------------------------------------
@jax.jit
def manager_forward(f_t, labels, h_m_t, c_m_t, prepared):
    """Single Manager.forward step. All compute happens inside one kernel."""
    B = f_t.shape[0]
    H = h_m_t.shape[1]
    G = prepared["w_fc_t"].shape[1]
    k_pad = prepared["w_gate"].shape[0]
    out_w = ((G + 2 * H + 127) // 128) * 128   # lane-dense packed output width

    vmem = pltpu.MemorySpace.VMEM
    packed = pl.pallas_call(
        _manager_step_kernel,
        out_shape=jax.ShapeDtypeStruct((B, out_w), jnp.float32),
        in_specs=[pl.BlockSpec(memory_space=vmem)] * 7,
        out_specs=pl.BlockSpec(memory_space=vmem),
        scratch_shapes=[pltpu.VMEM((B, k_pad), jnp.float32)],
    )(f_t, labels, h_m_t, c_m_t,
      prepared["w_gate"], prepared["w_fc_t"], prepared["b_fc"])

    sub_goal = packed[:, 0:G]
    h_new = packed[:, G:G + H]
    c_new = packed[:, G + H:G + 2 * H]
    return sub_goal, h_new, c_new


@jax.jit
def manager_rollout(f_seq, labels, h0, c0, prepared):
    """T fused Manager steps in a single pallas_call (grid over time)."""
    T, B, F = f_seq.shape
    L = labels.shape[1]
    H = h0.shape[1]
    G = prepared["w_fc_t"].shape[1]
    k_pad = prepared["w_gate"].shape[0]
    H4 = prepared["w_gate"].shape[1]

    goals, hc = pl.pallas_call(
        _manager_rollout_kernel,
        out_shape=(jax.ShapeDtypeStruct((T, B, G), jnp.float32),
                   jax.ShapeDtypeStruct((B, 2 * H), jnp.float32)),
        grid=(T,),
        in_specs=[
            pl.BlockSpec((None, B, F), lambda t: (t, 0, 0)),   # per-step features
            pl.BlockSpec((B, L), lambda t: (0, 0)),            # labels (constant)
            pl.BlockSpec((B, H), lambda t: (0, 0)),            # h0
            pl.BlockSpec((B, H), lambda t: (0, 0)),            # c0
            pl.BlockSpec((k_pad, H4), lambda t: (0, 0)),       # packed gate weight
            pl.BlockSpec((H, G), lambda t: (0, 0)),            # fc weight
            pl.BlockSpec((1, G), lambda t: (0, 0)),            # fc bias
        ],
        out_specs=(
            pl.BlockSpec((None, B, G), lambda t: (t, 0, 0)),   # per-step goals
            pl.BlockSpec((B, 2 * H), lambda t: (0, 0)),        # final [h|c]
        ),
        scratch_shapes=[
            pltpu.VMEM((B, k_pad), jnp.float32),               # [x|h|1|pad] scratch
            pltpu.VMEM((B, H), jnp.float32),                   # resident h state
            pltpu.VMEM((B, H), jnp.float32),                   # resident c state
        ],
        compiler_params=pltpu.CompilerParams(
            dimension_semantics=("arbitrary",)),               # sequential recurrence
    )(f_seq, labels, h0, c0,
      prepared["w_gate"], prepared["w_fc_t"], prepared["b_fc"])

    return goals, hc[:, 0:H], hc[:, H:2 * H]


# --------------------------------------------------------------------------
# Pure-JAX references
# --------------------------------------------------------------------------
def manager_reference(f_t, labels, h_m_t, c_m_t, params):
    x = jnp.concatenate([f_t, labels], axis=1)
    H = h_m_t.shape[1]
    gates = (x @ params["w_ih"].T + params["b_ih"]
             + h_m_t @ params["w_hh"].T + params["b_hh"])
    i_g = jax.nn.sigmoid(gates[:, 0 * H:1 * H])
    f_g = jax.nn.sigmoid(gates[:, 1 * H:2 * H])
    g_g = jnp.tanh(gates[:, 2 * H:3 * H])
    o_g = jax.nn.sigmoid(gates[:, 3 * H:4 * H])
    c_new = f_g * c_m_t + i_g * g_g
    h_new = o_g * jnp.tanh(c_new)
    sub = h_new @ params["w_fc"].T + params["b_fc"]
    norm = jnp.linalg.norm(sub, axis=1, keepdims=True)
    scale = jnp.where(norm > 1.0, 1.0 / (norm + 1e-7), 1.0)
    return sub * scale, h_new, c_new


def manager_rollout_reference(f_seq, labels, h0, c0, params):
    goals = []
    h, c = h0, c0
    for t in range(f_seq.shape[0]):
        g, h, c = manager_reference(f_seq[t], labels, h, c, params)
        goals.append(g)
    return jnp.stack(goals, axis=0), h, c


# --------------------------------------------------------------------------
if __name__ == "__main__":
    n_labels = 2
    batch_size = 4
    hidden_dim = 32
    goal_out_size = 16
    seq_len = 8
    input_size = goal_out_size + n_labels

    key = jax.random.PRNGKey(0)
    keys = jax.random.split(key, 12)

    # Deterministic parameter init: normal(std=0.1) as in _init_params().
    params = {
        "w_ih": 0.1 * jax.random.normal(keys[0], (4 * hidden_dim, input_size), jnp.float32),
        "w_hh": 0.1 * jax.random.normal(keys[1], (4 * hidden_dim, hidden_dim), jnp.float32),
        "b_ih": 0.1 * jax.random.normal(keys[2], (4 * hidden_dim,), jnp.float32),
        "b_hh": 0.1 * jax.random.normal(keys[3], (4 * hidden_dim,), jnp.float32),
        "w_fc": 0.1 * jax.random.normal(keys[4], (goal_out_size, hidden_dim), jnp.float32),
        "b_fc": 0.1 * jax.random.normal(keys[5], (goal_out_size,), jnp.float32),
    }
    # goal_init ~ truncated normal in [-0.2, 0.2]; unused in forward() (shape fidelity only).
    goal_init = jnp.clip(
        jax.random.truncated_normal(keys[6], -0.2, 0.2, (batch_size, goal_out_size)),
        -0.2, 0.2).astype(jnp.float32)
    del goal_init

    prepared = prepare_params(params)   # one-time weight packing

    f_t = jax.random.normal(keys[7], (batch_size, goal_out_size), jnp.float32)
    labels = jax.random.normal(keys[8], (batch_size, n_labels), jnp.float32)
    h_m_t = jax.random.normal(keys[9], (batch_size, hidden_dim), jnp.float32)
    c_m_t = jax.random.normal(keys[10], (batch_size, hidden_dim), jnp.float32)
    f_seq = jax.random.normal(keys[11], (seq_len, batch_size, goal_out_size), jnp.float32)

    # --- single step (matches Manager.forward) ---
    sub_goal, h_new, c_new = manager_forward(f_t, labels, h_m_t, c_m_t, prepared)
    jax.block_until_ready((sub_goal, h_new, c_new))
    ref_goal, ref_h, ref_c = manager_reference(f_t, labels, h_m_t, c_m_t, params)
    assert jnp.allclose(sub_goal, ref_goal, atol=2e-5, rtol=1e-4)
    assert jnp.allclose(h_new, ref_h, atol=2e-5, rtol=1e-4)
    assert jnp.allclose(c_new, ref_c, atol=2e-5, rtol=1e-4)

    # --- fused multi-step rollout: one pallas_call, state resident in VMEM ---
    goals, h_T, c_T = manager_rollout(f_seq, labels, h_m_t, c_m_t, prepared)
    jax.block_until_ready((goals, h_T, c_T))
    rg, rh, rc = manager_rollout_reference(f_seq, labels, h_m_t, c_m_t, params)
    assert jnp.allclose(goals, rg, atol=1e-4, rtol=1e-3)
    assert jnp.allclose(h_T, rh, atol=1e-4, rtol=1e-3)
    assert jnp.allclose(c_T, rc, atol=1e-4, rtol=1e-3)

    print("KERNEL_OK")
</pallas_src>

<mosaic_0001>
module attributes {stable_mosaic.version = 11 : i64} {
  func.func @_manager_step_kernel(%arg0: memref<4x16xf32, #tpu.memory_space<vmem>>, %arg1: memref<4x2xf32, #tpu.memory_space<vmem>>, %arg2: memref<4x32xf32, #tpu.memory_space<vmem>>, %arg3: memref<4x32xf32, #tpu.memory_space<vmem>>, %arg4: memref<128x128xf32, #tpu.memory_space<vmem>>, %arg5: memref<32x16xf32, #tpu.memory_space<vmem>>, %arg6: memref<1x16xf32, #tpu.memory_space<vmem>>, %arg7: memref<4x128xf32, #tpu.memory_space<vmem>>, %arg8: memref<4x128xf32, #tpu.memory_space<vmem>>) attributes {dimension_semantics = [], scalar_prefetch = 0 : i64, scratch_operands = 1 : i64, tpu.core_type = #tpu.core_type<tc>} {
    %c0 = arith.constant 0 : index
    %c0_0 = arith.constant 0 : index
    %0 = vector.load %arg0[%c0, %c0_0] : memref<4x16xf32, #tpu.memory_space<vmem>>, vector<4x16xf32>
    %c0_1 = arith.constant 0 : index
    %c0_2 = arith.constant 0 : index
    %1 = vector.load %arg1[%c0_1, %c0_2] : memref<4x2xf32, #tpu.memory_space<vmem>>, vector<4x2xf32>
    %c0_3 = arith.constant 0 : index
    %c0_4 = arith.constant 0 : index
    %2 = vector.load %arg2[%c0_3, %c0_4] : memref<4x32xf32, #tpu.memory_space<vmem>>, vector<4x32xf32>
    %c0_5 = arith.constant 0 : index
    %c0_6 = arith.constant 0 : index
    %3 = vector.load %arg3[%c0_5, %c0_6] : memref<4x32xf32, #tpu.memory_space<vmem>>, vector<4x32xf32>
    %c0_7 = arith.constant 0 : index
    %c0_8 = arith.constant 0 : index
    %4 = vector.load %arg4[%c0_7, %c0_8] : memref<128x128xf32, #tpu.memory_space<vmem>>, vector<128x128xf32>
    %c0_9 = arith.constant 0 : index
    %c0_10 = arith.constant 0 : index
    %5 = vector.load %arg5[%c0_9, %c0_10] : memref<32x16xf32, #tpu.memory_space<vmem>>, vector<32x16xf32>
    %c0_11 = arith.constant 0 : index
    %c0_12 = arith.constant 0 : index
    %6 = vector.load %arg6[%c0_11, %c0_12] : memref<1x16xf32, #tpu.memory_space<vmem>>, vector<1x16xf32>
    %cst = arith.constant 0.000000e+00 : f32
    %7 = vector.broadcast %cst : f32 to vector<4x128xf32>
    %c0_13 = arith.constant 0 : index
    %c0_14 = arith.constant 0 : index
    %8 = vector.load %arg8[%c0_13, %c0_14] : memref<4x128xf32, #tpu.memory_space<vmem>>, vector<4x128xf32>
    tpu.vector_store %arg8[%c0_13, %c0_14], %7 {strides = array<i32>} : memref<4x128xf32, #tpu.memory_space<vmem>>, vector<4x128xf32>,
    %c0_15 = arith.constant 0 : index
    %c0_16 = arith.constant 0 : index
    %9 = vector.load %arg8[%c0_15, %c0_16] : memref<4x128xf32, #tpu.memory_space<vmem>>, vector<4x16xf32>
    tpu.vector_store %arg8[%c0_15, %c0_16], %0 {strides = array<i32>} : memref<4x128xf32, #tpu.memory_space<vmem>>, vector<4x16xf32>,
    %c0_17 = arith.constant 0 : index
    %c16 = arith.constant 16 : index
    %10 = vector.load %arg8[%c0_17, %c16] : memref<4x128xf32, #tpu.memory_space<vmem>>, vector<4x2xf32>
    tpu.vector_store %arg8[%c0_17, %c16], %1 {strides = array<i32>} : memref<4x128xf32, #tpu.memory_space<vmem>>, vector<4x2xf32>,
    %c0_18 = arith.constant 0 : index
    %c18 = arith.constant 18 : index
    %11 = vector.load %arg8[%c0_18, %c18] : memref<4x128xf32, #tpu.memory_space<vmem>>, vector<4x32xf32>
    tpu.vector_store %arg8[%c0_18, %c18], %2 {strides = array<i32>} : memref<4x128xf32, #tpu.memory_space<vmem>>, vector<4x32xf32>,
    %cst_19 = arith.constant 1.000000e+00 : f32
    %12 = vector.broadcast %cst_19 : f32 to vector<4x1xf32>
    %c0_20 = arith.constant 0 : index
    %c50 = arith.constant 50 : index
    %13 = vector.load %arg8[%c0_20, %c50] : memref<4x128xf32, #tpu.memory_space<vmem>>, vector<4x1xf32>
    tpu.vector_store %arg8[%c0_20, %c50], %12 {strides = array<i32>} : memref<4x128xf32, #tpu.memory_space<vmem>>, vector<4x1xf32>,
    %c0_21 = arith.constant 0 : index
    %c0_22 = arith.constant 0 : index
    %14 = vector.load %arg8[%c0_21, %c0_22] : memref<4x128xf32, #tpu.memory_space<vmem>>, vector<4x128xf32>
    %cst_23 = arith.constant dense<0.000000e+00> : vector<4x128xf32>
    %15 = tpu.matmul %14, %4, %cst_23 {dimension_numbers = #tpu.dot_dimension_numbers<[1], [0], [0], [1], [0, 0, 1, 1], [], []>} : vector<4x128xf32>, vector<128x128xf32>, vector<4x128xf32> -> vector<4x128xf32>
    %16 = arith.negf %15 : vector<4x128xf32>
    %17 = math.exp %16 : vector<4x128xf32>
    %cst_24 = arith.constant 1.000000e+00 : f32
    %18 = vector.broadcast %cst_24 : f32 to vector<4x128xf32>
    %19 = arith.addf %18, %17 : vector<4x128xf32>
    %20 = arith.divf %18, %19 : vector<4x128xf32>
    %21 = vector.extract_strided_slice %20 {offsets = [0, 0], sizes = [4, 32], strides = [1, 1]} : vector<4x128xf32> to vector<4x32xf32>
    %22 = vector.extract_strided_slice %20 {offsets = [0, 32], sizes = [4, 32], strides = [1, 1]} : vector<4x128xf32> to vector<4x32xf32>
    %23 = vector.extract_strided_slice %20 {offsets = [0, 96], sizes = [4, 32], strides = [1, 1]} : vector<4x128xf32> to vector<4x32xf32>
    %24 = vector.extract_strided_slice %15 {offsets = [0, 64], sizes = [4, 32], strides = [1, 1]} : vector<4x128xf32> to vector<4x32xf32>
    %25 = math.tanh %24 : vector<4x32xf32>
    %26 = arith.mulf %22, %3 : vector<4x32xf32>
    %27 = arith.mulf %21, %25 : vector<4x32xf32>
    %28 = arith.addf %26, %27 : vector<4x32xf32>
    %29 = math.tanh %28 : vector<4x32xf32>
    %30 = arith.mulf %23, %29 : vector<4x32xf32>
    %cst_25 = arith.constant dense<0.000000e+00> : vector<4x16xf32>
    %31 = tpu.matmul %30, %5, %cst_25 {dimension_numbers = #tpu.dot_dimension_numbers<[1], [0], [0], [1], [0, 0, 1, 1], [], []>} : vector<4x32xf32>, vector<32x16xf32>, vector<4x16xf32> -> vector<4x16xf32>
    %32 = vector.broadcast %6 : vector<1x16xf32> to vector<4x16xf32>
    %33 = arith.addf %31, %32 : vector<4x16xf32>
    %34 = arith.mulf %33, %33 : vector<4x16xf32>
    %cst_26 = arith.constant dense<0.000000e+00> : vector<4xf32>
    %35 = vector.multi_reduction <add>, %34, %cst_26 [1] : vector<4x16xf32> to vector<4xf32>
    %36 = vector.shape_cast %35 : vector<4xf32> to vector<4x1xf32>
    %cst_27 = arith.constant 1.000000e+00 : f32
    %37 = vector.broadcast %cst_27 : f32 to vector<4x1xf32>
    %38 = arith.cmpf ogt, %36, %37 : vector<4x1xf32>
    %39 = math.rsqrt %36 : vector<4x1xf32>
    %cst_28 = arith.constant 1.000000e+00 : f32
    %40 = vector.broadcast %cst_28 : f32 to vector<4x1xf32>
    %41 = arith.select %38, %39, %40 : vector<4x1xi1>, vector<4x1xf32>
    %42 = vector.broadcast %41 : vector<4x1xf32> to vector<4x16xf32>
    %43 = arith.mulf %33, %42 : vector<4x16xf32>
    %cst_29 = arith.constant 0.000000e+00 : f32
    %44 = vector.broadcast %cst_29 : f32 to vector<4x128xf32>
    %c0_30 = arith.constant 0 : index
    %c0_31 = arith.constant 0 : index
    %45 = vector.load %arg7[%c0_30, %c0_31] : memref<4x128xf32, #tpu.memory_space<vmem>>, vector<4x128xf32>
    tpu.vector_store %arg7[%c0_30, %c0_31], %44 {strides = array<i32>} : memref<4x128xf32, #tpu.memory_space<vmem>>, vector<4x128xf32>,
    %c0_32 = arith.constant 0 : index
    %c0_33 = arith.constant 0 : index
    %46 = vector.load %arg7[%c0_32, %c0_33] : memref<4x128xf32, #tpu.memory_space<vmem>>, vector<4x16xf32>
    tpu.vector_store %arg7[%c0_32, %c0_33], %43 {strides = array<i32>} : memref<4x128xf32, #tpu.memory_space<vmem>>, vector<4x16xf32>,
    %c0_34 = arith.constant 0 : index
    %c16_35 = arith.constant 16 : index
    %47 = vector.load %arg7[%c0_34, %c16_35] : memref<4x128xf32, #tpu.memory_space<vmem>>, vector<4x32xf32>
    tpu.vector_store %arg7[%c0_34, %c16_35], %30 {strides = array<i32>} : memref<4x128xf32, #tpu.memory_space<vmem>>, vector<4x32xf32>,
    %c0_36 = arith.constant 0 : index
    %c48 = arith.constant 48 : index
    %48 = vector.load %arg7[%c0_36, %c48] : memref<4x128xf32, #tpu.memory_space<vmem>>, vector<4x32xf32>
    tpu.vector_store %arg7[%c0_36, %c48], %28 {strides = array<i32>} : memref<4x128xf32, #tpu.memory_space<vmem>>, vector<4x32xf32>,
    return
  }
}

</mosaic_0001>

<bundles_post_ra>
// kernel: manager_forward.1
= control target key start
LH: loop header
LB: loop body
LE: loop exit
PB: predicated region body
PF: predicated region fallthrough
CT: control target
= control target key end

     0   :  { %12 = vsyncpa [#allocation4], 0  ;;  %s436_s24 = smov [#allocation3]   ;;  %s554_s0 = inlined_call_operand.vmem [shape: f32[4,16], index: 0, kind: input, shape index: {}]   ;;  %s555_s1 = inlined_call_operand.vmem [shape: f32[4,2], index: 1, kind: input, shape index: {}]   ;;  %s556_s2 = inlined_call_operand.vmem [shape: f32[4,32], index: 2, kind: input, shape index: {}]   ;;  %s557_s3 = inlined_call_operand.vmem [shape: f32[4,32], index: 3, kind: input, shape index: {}]   ;;  %s558_s4 = inlined_call_operand.hbm [shape: f32[128,128], index: 4, kind: input, shape index: {}]   ;;  %s559_s5 = inlined_call_operand.vmem [shape: f32[32,16], index: 5, kind: input, shape index: {}]   ;;  %s560_s6 = inlined_call_operand.vmem [shape: f32[1,16], index: 6, kind: input, shape index: {}]   ;;  %s561_s7 = inlined_call_operand.vmem [shape: f32[4,128], index: 7, kind: output, shape index: {}]  }
   0x1   :  { %s26_s25 = sshll.u32 %s436_s24, 4  ;;  %s412_s28 = scalar_lea.hbm %s558_s4, 2048  ;;  %s27_s25 = int_to_ptr.vmem [resolvable:$true] %s26_s25 }
   0x2   :  { %p413_p0 = scmp.ne.s32.totalorder %s558_s4, %s412_s28  ;;  %p416_p1 = scmp.lt.u32.totalorder %s412_s28, %s558_s4 }
   0x4   :  { %p418_p2 = pnand %p416_p1, %p413_p0 }
   0x6   :  { %421 = shalt.err (!%p418_p2)
}
   0x7   :  { %s422_s10 = scalar_lea.vmem %s27_s25, 2048  ;;  %p427_p4 = scmp.lt.s32.totalorder %s27_s25, %s27_s25 }
   0x8   :  { %p423_p3 = scmp.ne.s32.totalorder %s27_s25, %s422_s10  ;;  %p428_p5 = scmp.lt.s32.totalorder %s422_s10, %s422_s10 }
   0xa   :  { %p429_p6 = por %p428_p5, %p427_p4 }
   0xc   :  { %p430_p7 = pnand %p429_p6, %p423_p3 }
   0xe   :  { %433 = shalt.err (!%p430_p7)
}
   0xf   :  { %s437_s11 = smov 128   ;;  %s438_s12 = smov 8  }
  0x10   :  { %32 = dma.hbm_to_vmem [thread:$0]  %s558_s4, 2048, %s27_s25, [#allocation4], %s437_s11, %s437_s11, %s438_s12  }
  0x11   :  { %434 = dma.done.wait [#allocation4], 2048  }
  0x12   :  { %435 = vsyncadd [#allocation4], 4294965248  ;;  %v439_v0 = vmov 0.0|0.0   ;;  %v440_v1 = vmov 0.0   ;;  %vm441_vm0 = vmmov 0   ;;  %v44_v3 = vld [vmem:[#allocation3] sm:$0xff] }
  0x13   :  { %360 = vmatprep.subr.bf16.mxu0 %v439_v0  ;;  %65 = vst [vmem:[#allocation2] sm:$0xf] %v440_v1  ;;  %271 = vst [vmem:[%s561_s7] sm:$0xf] %v440_v1  ;;  %384 = vmatprep.subr.bf16.mxu1 %v439_v0  ;;  %v41_v2 = vld [vmem:[%s555_s1] sm:$0xf]  ;;  %s442_s4 = smov 16  }
  0x14   :  { %346 = vmatprep.mubr.msk.f32.mxu0 %vm441_vm0, %v440_v1  ;;  %357 = vmatprep.mubr.msk.f32.mxu1 %vm441_vm0, %v440_v1  ;;  %v45_v4 = vld [vmem:[#allocation3 + $0x8] sm:$0xff]  ;;  %v46_v5 = vld [vmem:[#allocation3 + $0x10] sm:$0xff]  ;;  %v47_v6 = vld [vmem:[#allocation3 + $0x18] sm:$0xff]  ;;  %vm66_vm1 = vcmask 125952   ;;  %s443_s1 = smov 18   ;;  %vm72_vm2 = vcmask 142464  }
  0x15   :  { %69 = vrot.lane.b32.xlu0 %v41_v2, %s442_s4  ;;  %v42_v7 = vld [vmem:[%s556_s2] sm:$0xf]  ;;  %v361_v8 = vpack.c.bf16 %v45_v4, %v44_v3  ;;  %v364_v9 = vpack.c.bf16 %v47_v6, %v46_v5  ;;  %v48_v11 = vld [vmem:[#allocation3 + $0x20] sm:$0xff]  ;;  %v49_v12 = vld [vmem:[#allocation3 + $0x28] sm:$0xff]  ;;  %vm78_vm3 = vcmask 404624   ;;  %vm80_vm4 = vcmask 413072  }
  0x16   :  { %v40_v10 = vld [vmem:[%s554_s0] sm:$0xf]  ;;  %v367_v13 = vpack.c.bf16 %v49_v12, %v48_v11  ;;  %v50_v14 = vld [vmem:[#allocation3 + $0x30] sm:$0xff]  ;;  %v52_v17 = vld [vmem:[#allocation3 + $0x40] sm:$0xff]  ;;  %v444_v31 = vmov 1.0   ;;  %s445_s0 = smov 64  }
  0x17   :  { %362 = vmatpush3.bf16.msra.mxu0 %v361_v8  ;;  %67 = vst.msk [vmem:[#allocation2] sm:$0xf] %vm66_vm1, %v40_v10  ;;  %v51_v15 = vld [vmem:[#allocation3 + $0x38] sm:$0xff]  ;;  %v53_v18 = vld [vmem:[#allocation3 + $0x48] sm:$0xff]  ;;  %v54_v20 = vld [vmem:[#allocation3 + $0x50] sm:$0xff]  ;;  %s446_s24 = smov 32  }
  0x18   :  { %363 = vmatprep.subr.bf16.mxu0 %v439_v0  ;;  %v370_v16 = vpack.c.bf16 %v51_v15, %v50_v14  ;;  %v373_v19 = vpack.c.bf16 %v53_v18, %v52_v17  ;;  %v55_v21 = vld [vmem:[#allocation3 + $0x58] sm:$0xff]  ;;  %v56_v23 = vld [vmem:[#allocation3 + $0x60] sm:$0xff]  ;;  %v57_v24 = vld [vmem:[#allocation3 + $0x68] sm:$0xff]  ;;  %s447_s9 = smov 48   ;;  %vm190_vm5 = vcmask 261120   ;;  %vm276_vm7 = vcmask 388224  }
  0x19   :  { %75 = vrot.lane.b32.xlu0 %v42_v7, %s443_s1  ;;  %v376_v22 = vpack.c.bf16 %v55_v21, %v54_v20  ;;  %v379_v25 = vpack.c.bf16 %v57_v24, %v56_v23  ;;  %v58_v26 = vld [vmem:[#allocation3 + $0x70] sm:$0xff]  ;;  %v59_v27 = vld [vmem:[#allocation3 + $0x78] sm:$0xff]  ;;  %v61_v48 = vld [vmem:[%s559_s5 + $0x8] sm:$0xff]  ;;  %vm282_vm8 = vcmask 650624  }
  0x1a   :  { %v382_v28 = vpack.c.bf16 %v59_v27, %v58_v26  ;;  %v43_v36 = vld [vmem:[%s557_s3] sm:$0xf]  ;;  %v62_v49 = vld [vmem:[%s559_s5 + $0x10] sm:$0xff]  ;;  %v63_v51 = vld [vmem:[%s559_s5 + $0x18] sm:$0xff] }
  0x1b   :  { %365 = vmatpush3.bf16.msra.mxu0 %v364_v9  ;;  %v60_v47 = vld [vmem:[%s559_s5] sm:$0xff]  ;;  %v388_v53 = vpack.c.bf16 %v63_v51, %v62_v49 }
  0x1c   :  { %366 = vmatprep.subr.bf16.mxu0 %v439_v0  ;;  %v385_v50 = vpack.c.bf16 %v61_v48, %v60_v47  ;;  %v290_v57 = vld [vmem:[%s560_s6] ss:$0 sm:$0xff] }
  0x1e   :  { %386 = vmatpush3.bf16.msra.mxu1 %v385_v50 }
  0x1f   :  { %368 = vmatpush3.bf16.msra.mxu0 %v367_v13  ;;  %387 = vmatprep.subr.bf16.mxu1 %v439_v0 }
  0x20   :  { %369 = vmatprep.subr.bf16.mxu0 %v439_v0 }
  0x22   :  { %389 = vmatpush3.bf16.msra.mxu1 %v388_v53 }
  0x23   :  { %371 = vmatpush3.bf16.msra.mxu0 %v370_v16 }
  0x24   :  { %372 = vmatprep.subr.bf16.mxu0 %v439_v0 }
  0x27   :  { %374 = vmatpush3.bf16.msra.mxu0 %v373_v19 }
  0x28   :  { %375 = vmatprep.subr.bf16.mxu0 %v439_v0 }
  0x2b   :  { %377 = vmatpush3.bf16.msra.mxu0 %v376_v22 }
  0x2c   :  { %378 = vmatprep.subr.bf16.mxu0 %v439_v0 }
  0x2f   :  { %380 = vmatpush3.bf16.msra.mxu0 %v379_v25 }
  0x30   :  { %381 = vmatprep.subr.bf16.mxu0 %v439_v0 }
  0x33   :  { %383 = vmatpush3.bf16.msra.mxu0 %v382_v28 }
  0x87   :  { %v70_v29 = vpop.permute.xlu0 %69 }
  0x88   :  { %73 = vst.msk [vmem:[#allocation2] sm:$0xf] %vm72_vm2, %v70_v29 }
  0x8b   :  { %v76_v30 = vpop.permute.xlu0 %75 }
  0x8c   :  { %79 = vst.msk [vmem:[#allocation2] sm:$0xf] %vm78_vm3, %v76_v30 }
  0x8d   :  { %81 = vst.msk [vmem:[#allocation2] sm:$0xf] %vm80_vm4, %v444_v31 }
  0x94   :  { %v82_v32 = vld [vmem:[#allocation2] sm:$0xf] }
  0x95   :  { %347 = vmatmul.mubr.f32.vlgmr.msra.gmra.mrb[0].mxu0 %v82_v32 }
 0x168   :  { %v149_v33 = vpop.f32.mrb[0].mxu0 }
 0x169   :  { %402 = vtanh.f32 %v149_v33  ;;  %v348_v34 = vpop.f32.mrb[1].mxu0  ;;  %v289_v37 = vmul.f32 -1.442695, %v149_v33 }
 0x16b   :  { %404 = vpow2.f32 %v289_v37 }
 0x173   :  { %v403_v35 = vpop.eup %402 }
 0x174   :  { %166 = vrot.lane.b32.xlu1 %v403_v35, %s445_s0 }
 0x175   :  { %v405_v38 = vpop.eup %404 }
 0x176   :  { %v156_v39 = vadd.f32 1.0, %v405_v38 }
 0x178   :  { %161 = vrot.lane.b32.xlu1 %v43_v36, %s446_s24  ;;  %406 = vrcp.f32 %v156_v39 }
 0x182   :  { %v407_v40 = vpop.eup %406 }
 0x1e6   :  { %v167_v41 = vpop.permute.xlu1 %166 }
 0x1e7   :  { %v169_v42 = vmul.f32 %v407_v40, %v167_v41 }
 0x1e9   :  { %171 = vrot.lane.b32.xlu0 %v169_v42, %s446_s24 }
 0x1ea   :  { %v162_v43 = vpop.permute.xlu1 %161 }
 0x1eb   :  { %v164_v44 = vmul.f32 %v407_v40, %v162_v43 }
 0x25b   :  { %v172_v45 = vpop.permute.xlu0 %171 }
 0x25c   :  { %v174_v46 = vadd.f32 %v172_v45, %v164_v44 }
 0x25e   :  { %408 = vtanh.f32 %v174_v46 }
 0x268   :  { %v409_v52 = vpop.eup %408 }
 0x269   :  { %177 = vrot.lane.b32.xlu1 %v409_v52, %s445_s0 }
 0x2db   :  { %v178_v54 = vpop.permute.xlu1 %177 }
 0x2dc   :  { %v180_v55 = vmul.f32 %v407_v40, %v178_v54 }
 0x2de   :  { %188 = vrot.lane.b32.xlu0 %v180_v55, %s446_s24 }
 0x2e2   :  { %273 = vrot.lane.b32.xlu0 %v180_v55, %s447_s9 }
 0x2e6   :  { %279 = vrot.lane.b32.xlu0 %v174_v46, %s442_s4 }
 0x350   :  { %v189_v56 = vpop.permute.xlu0 %188 }
 0x351   :  { %358 = vmatmul.mubr.msk.f32.vlgmr.msra.gmra.mrb[0].mxu1 %vm190_vm5, %v189_v56 }
 0x354   :  { %v274_v0 = vpop.permute.xlu0 %273 }
 0x358   :  { %v280_v4 = vpop.permute.xlu0 %279 }
 0x424   :  { %v259_v58 = vpop.f32.mrb[0].mxu1 }
 0x425   :  { %v260_v59 = vadd.f32 %v290_v57, %v259_v58  ;;  %v359_v60 = vpop.f32.mrb[1].mxu1 }
 0x427   :  { %v263_v61 = vmul.f32 %v260_v59, %v260_v59 }
 0x429   :  { %v264_v62 = vsel %vm66_vm1, %v263_v61, 0.0 }
 0x42a   :  { %265 = vadd.xlane.f32.xlu1 %v264_v62 }
 0x4b7   :  { %v266_v63 = vpop.xlane.xlu1 %265 }
 0x4b8   :  { %410 = vrsqrt.f32 %v266_v63  ;;  %vm267_vm6 = vcmp.gt.f32.partialorder %v266_v63, 1.0 }
 0x4c2   :  { %v411_v1 = vpop.eup %410 }
 0x4c3   :  { %v269_v2 = vsel %vm267_vm6, %v411_v1, 1.0 }
 0x4c4   :  { %v270_v3 = vmul.f32 %v269_v2, %v260_v59 }
 0x4c6   :  { %272 = vst.msk [vmem:[%s561_s7] sm:$0xf] %vm66_vm1, %v270_v3 }
 0x4c7   :  { %277 = vst.msk [vmem:[%s561_s7] sm:$0xf] %vm276_vm7, %v274_v0 }
 0x4c8   :  { %283 = vst.msk [vmem:[%s561_s7] sm:$0xf] %vm282_vm8, %v280_v4 }
 0x4c9   :  { %288 = vsyncpa [#allocation4], 1 }

</bundles_post_ra>
